<compile_context>
chip_gen: v7x
topology: tpu7x:2x2x1
jax: 0.10.0
libtpu: 0.0.40
codegen_flags: <defaults>
</compile_context>

<pallas_src>
import functools
import math

import jax
import jax.numpy as jnp
from jax.experimental import pallas as pl
from jax.experimental.pallas import tpu as pltpu


# ----------------------------------------------------------------------------
# Generation-aware budgets + feature probes
# ----------------------------------------------------------------------------
def _tpu_budget():
    """Pick (vmem_limit_bytes, block_m) from the chip's physical VMEM."""
    try:
        cap = pltpu.get_tpu_info().vmem_capacity_bytes
    except Exception:
        cap = None
    if cap is not None and cap <= 64 * 1024 * 1024:
        # v7x: 64 MiB physical -> leave headroom for compiler scratch,
        # f32 epilogue temporaries and double-buffered DMAs.
        return 48 * 1024 * 1024, 512
    if cap is not None and cap >= 128 * 1024 * 1024:
        # v5e / v6e: 128 MiB physical -> bigger row tiles amortize the
        # ~0.35 us per-grid-step overhead on the memory-bound kernels.
        return 96 * 1024 * 1024, 1024
    # Unknown generation: previously-validated conservative settings.
    return 64 * 1024 * 1024, 512


_VMEM_LIMIT, _BLOCK_M = _tpu_budget()


def _probe_buffered1():
    """Check whether pipeline_mode=pl.Buffered(1) lowers/runs on this JAX."""
    try:
        def k(x_ref, w_ref, o_ref):
            o_ref[...] = x_ref[...] + w_ref[...]

        f = pl.pallas_call(
            k,
            out_shape=jax.ShapeDtypeStruct((16, 128), jnp.float32),
            grid=(2,),
            in_specs=[
                pl.BlockSpec((8, 128), lambda i: (i, 0)),
                pl.BlockSpec((8, 128), lambda i: (0, 0),
                             pipeline_mode=pl.Buffered(1)),
            ],
            out_specs=pl.BlockSpec((8, 128), lambda i: (i, 0)),
        )
        jax.block_until_ready(
            f(jnp.ones((16, 128), jnp.float32), jnp.ones((8, 128), jnp.float32)))
        return True
    except Exception:
        return False


_USE_BUFFERED1 = _probe_buffered1()


def _const_spec(shape):
    """BlockSpec for a block that never changes across the 1-D grid.

    Single-buffered when supported: the FFN weight (e.g. 768x3072 bf16
    ~ 4.5 MiB) would otherwise be double-buffered for zero benefit.
    """
    idx = lambda i: (0,) * len(shape)
    if _USE_BUFFERED1:
        return pl.BlockSpec(shape, idx, pipeline_mode=pl.Buffered(1))
    return pl.BlockSpec(shape, idx)


# ----------------------------------------------------------------------------
# Pallas kernels
# ----------------------------------------------------------------------------
def _dense_kernel(x_ref, w_ref, b_ref, o_ref, *, act):
    """y = act(x @ w + b); bf16 MXU inputs, f32 accumulation / epilogue."""
    y = jnp.dot(x_ref[...], w_ref[...], preferred_element_type=jnp.float32)
    y = y + b_ref[...].astype(jnp.float32)
    if act == "relu":
        y = jnp.maximum(y, 0.0)
    elif act == "gelu":
        # tanh-approximate GELU; tanh lands on the EUP slot, polynomial kept in
        # f32 (safe on v5e's f32-only VPU).  The cheaper sigmoid-form GELU is a
        # further VALU cut on v6e/v7x but changes numerics, so not enabled.
        c = math.sqrt(2.0 / math.pi)
        y = 0.5 * y * (1.0 + jnp.tanh(c * (y + 0.044715 * y * y * y)))
    elif act == "tanh":
        y = jnp.tanh(y)
    o_ref[...] = y.astype(o_ref.dtype)


def dense(x2d, w, b, act="none", out_dtype=None, block_m=None):
    M, K = x2d.shape
    K2, N = w.shape
    assert K == K2
    out_dtype = out_dtype or x2d.dtype
    block_m = block_m or _BLOCK_M
    bm = M if M <= block_m else block_m
    # NOTE (v7x): when M <= block_m (pooled / classifier-hidden calls) the grid
    # collapses to a single step and only one TensorCore runs -- accepted, the
    # work is tiny relative to the (B*S)-row calls.
    return pl.pallas_call(
        functools.partial(_dense_kernel, act=act),
        out_shape=jax.ShapeDtypeStruct((M, N), out_dtype),
        grid=(pl.cdiv(M, bm),),
        in_specs=[
            pl.BlockSpec((bm, K), lambda i: (i, 0)),
            _const_spec((K, N)),
            _const_spec((1, N)),
        ],
        out_specs=pl.BlockSpec((bm, N), lambda i: (i, 0)),
        compiler_params=pltpu.CompilerParams(
            dimension_semantics=("parallel",),
            vmem_limit_bytes=_VMEM_LIMIT),
    )(x2d, w, b.reshape(1, N))


def _dense_res_ln_kernel(x_ref, w_ref, b_ref, r_ref, g_ref, be_ref, o_ref, *, eps):
    """y = LayerNorm(residual + x @ w + b) * gamma + beta  (stats in f32)."""
    y = jnp.dot(x_ref[...], w_ref[...], preferred_element_type=jnp.float32)
    y = y + b_ref[...].astype(jnp.float32) + r_ref[...].astype(jnp.float32)
    mu = jnp.mean(y, axis=-1, keepdims=True)
    var = jnp.mean(jnp.square(y - mu), axis=-1, keepdims=True)
    y = (y - mu) * jax.lax.rsqrt(var + eps)
    y = y * g_ref[...].astype(jnp.float32) + be_ref[...].astype(jnp.float32)
    o_ref[...] = y.astype(o_ref.dtype)


def dense_res_ln(x2d, w, b, residual, gamma, beta, out_dtype=None, block_m=None):
    M, K = x2d.shape
    K2, N = w.shape
    assert K == K2 and residual.shape == (M, N)
    out_dtype = out_dtype or residual.dtype
    block_m = block_m or _BLOCK_M
    bm = M if M <= block_m else block_m
    return pl.pallas_call(
        functools.partial(_dense_res_ln_kernel, eps=1e-12),
        out_shape=jax.ShapeDtypeStruct((M, N), out_dtype),
        grid=(pl.cdiv(M, bm),),
        in_specs=[
            pl.BlockSpec((bm, K), lambda i: (i, 0)),
            _const_spec((K, N)),
            _const_spec((1, N)),
            pl.BlockSpec((bm, N), lambda i: (i, 0)),
            _const_spec((1, N)),
            _const_spec((1, N)),
        ],
        out_specs=pl.BlockSpec((bm, N), lambda i: (i, 0)),
        compiler_params=pltpu.CompilerParams(
            dimension_semantics=("parallel",),
            vmem_limit_bytes=_VMEM_LIMIT),
    )(x2d, w, b.reshape(1, N), residual, gamma.reshape(1, N), beta.reshape(1, N))


def _layernorm_kernel(x_ref, g_ref, b_ref, o_ref, *, eps):
    x = x_ref[...].astype(jnp.float32)
    mu = jnp.mean(x, axis=-1, keepdims=True)
    var = jnp.mean(jnp.square(x - mu), axis=-1, keepdims=True)
    y = (x - mu) * jax.lax.rsqrt(var + eps)
    o_ref[...] = (y * g_ref[...] + b_ref[...]).astype(o_ref.dtype)


def layernorm(x2d, g, b, out_dtype=None, block_m=None):
    M, H = x2d.shape
    out_dtype = out_dtype or x2d.dtype
    block_m = block_m or _BLOCK_M
    bm = M if M <= block_m else block_m
    return pl.pallas_call(
        functools.partial(_layernorm_kernel, eps=1e-12),
        out_shape=jax.ShapeDtypeStruct((M, H), out_dtype),
        grid=(pl.cdiv(M, bm),),
        in_specs=[
            pl.BlockSpec((bm, H), lambda i: (i, 0)),
            _const_spec((1, H)),
            _const_spec((1, H)),
        ],
        out_specs=pl.BlockSpec((bm, H), lambda i: (i, 0)),
        compiler_params=pltpu.CompilerParams(
            dimension_semantics=("parallel",),
            vmem_limit_bytes=_VMEM_LIMIT),
    )(x2d, g.reshape(1, H), b.reshape(1, H))


def _attn_kernel(qkv_ref, m_ref, o_ref, *, nh):
    """All heads of one batch element: softmax(q k^T + mask) v.

    The 1/sqrt(Dh) scale is folded into the Q columns of the fused QKV weight
    (and bias) at parameter-build time, so no score-matrix multiply is needed.
    Each head's context is stored straight into its static Dh-wide column
    slice of the output block: no per-head context list, no concatenate, and
    the per-head score / prob / context temporaries are dead at the store
    (nothing forces all heads' (S,S) tiles to be live simultaneously).
    Dh=64 per-head slices are inherently sub-128-lane (standard MHA limit).
    """
    S = qkv_ref.shape[1]
    H = qkv_ref.shape[2] // 3
    Dh = H // nh
    qkv = qkv_ref[0]                    # (S, 3H) bf16
    mask = m_ref[0]                     # (1, S)  f32 additive key mask
    for h in range(nh):                 # static unroll over heads
        qh = qkv[:, h * Dh:(h + 1) * Dh]
        kh = qkv[:, H + h * Dh:H + (h + 1) * Dh]
        vh = qkv[:, 2 * H + h * Dh:2 * H + (h + 1) * Dh]
        # q @ k^T via dot_general contracting last dims (no explicit transpose)
        s = jax.lax.dot_general(qh, kh, (((1,), (1,)), ((), ())),
                                preferred_element_type=jnp.float32)
        s = s + mask                    # (S,S) + (1,S) broadcast over queries
        s = s - jnp.max(s, axis=-1, keepdims=True)
        p = jnp.exp(s)
        p = p * pl.reciprocal(jnp.sum(p, axis=-1, keepdims=True), approx=True)
        ctx = jnp.dot(p.astype(vh.dtype), vh, preferred_element_type=jnp.float32)
        o_ref[0, :, h * Dh:(h + 1) * Dh] = ctx.astype(o_ref.dtype)


def attention(qkv, addmask, nh):
    # qkv: (B, S, 3H) bf16; addmask: (B, 1, S) f32 additive (0 / -1e9)
    # Blocks are full-extent along (S, 3H)/(S, H), so the (8,128) rule is
    # always satisfied.  grid=(B,) 'parallel' shards over the 2 TCs on v7x
    # whenever B >= 2.
    B, S, H3 = qkv.shape
    H = H3 // 3
    return pl.pallas_call(
        functools.partial(_attn_kernel, nh=nh),
        out_shape=jax.ShapeDtypeStruct((B, S, H), qkv.dtype),
        grid=(B,),
        in_specs=[
            pl.BlockSpec((1, S, H3), lambda b: (b, 0, 0)),
            pl.BlockSpec((1, 1, S), lambda b: (b, 0, 0)),
        ],
        out_specs=pl.BlockSpec((1, S, H), lambda b: (b, 0, 0)),
        compiler_params=pltpu.CompilerParams(
            dimension_semantics=("parallel",),
            vmem_limit_bytes=_VMEM_LIMIT),
    )(qkv, addmask)


# ----------------------------------------------------------------------------
# Parameter construction (deterministic, synthetic "pretrained" BERT)
# ----------------------------------------------------------------------------
def _xavier(key, shape, dtype=jnp.float32):
    fan_in, fan_out = shape
    limit = math.sqrt(6.0 / (fan_in + fan_out))
    return jax.random.uniform(key, shape, jnp.float32, -limit, limit).astype(dtype)


def make_params(key, *, vocab, max_pos, H, nh, inter, layers,
                tag_dim, slot_dim, intent_dim, hidden_units, context):
    keys = iter(jax.random.split(key, 256))
    nk = lambda: next(keys)
    bf16 = jnp.bfloat16
    scale = 1.0 / math.sqrt(H // nh)

    bert = {
        "num_heads": nh,
        "word_emb": 0.02 * jax.random.normal(nk(), (vocab, H), jnp.float32),
        "pos_emb": 0.02 * jax.random.normal(nk(), (max_pos, H), jnp.float32),
        "type_emb": 0.02 * jax.random.normal(nk(), (2, H), jnp.float32),
        "emb_ln_g": jnp.ones((H,), jnp.float32),
        "emb_ln_b": jnp.zeros((H,), jnp.float32),
        "pooler_w": _xavier(nk(), (H, H), bf16),
        "pooler_b": jnp.zeros((H,), jnp.float32),
        "layers": [],
    }
    for _ in range(layers):
        # fused QKV weight: concat of independently-initialized q/k/v
        # projections; the 1/sqrt(Dh) attention scale is folded into the Q
        # columns (a non-zero Q bias would have to be scaled the same way).
        qw, kw, vw = _xavier(nk(), (H, H)), _xavier(nk(), (H, H)), _xavier(nk(), (H, H))
        bert["layers"].append({
            "qkv_w": jnp.concatenate([qw * scale, kw, vw], axis=1).astype(bf16),
            "qkv_b": jnp.zeros((3 * H,), jnp.float32),
            "o_w": _xavier(nk(), (H, H), bf16), "o_b": jnp.zeros((H,), jnp.float32),
            "ln1_g": jnp.ones((H,), jnp.float32), "ln1_b": jnp.zeros((H,), jnp.float32),
            "i_w": _xavier(nk(), (H, inter), bf16), "i_b": jnp.zeros((inter,), jnp.float32),
            "f_w": _xavier(nk(), (inter, H), bf16), "f_b": jnp.zeros((H,), jnp.float32),
            "ln2_g": jnp.ones((H,), jnp.float32), "ln2_b": jnp.zeros((H,), jnp.float32),
        })

    feat = 2 * H if context else H
    params = {
        "bert": bert,
        "context": context,
        "hidden_units": hidden_units,
        "tag_dim": tag_dim, "slot_dim": slot_dim, "intent_dim": intent_dim,
        "intent_weight": jnp.ones((intent_dim,), jnp.float32),
        "slot_weight": jnp.ones((slot_dim,), jnp.float32),
        # hidden projections (xavier_uniform, zero bias) -- Pallas dense path
        "intent_hidden_w": _xavier(nk(), (feat, hidden_units), bf16),
        "intent_hidden_b": jnp.zeros((hidden_units,), jnp.float32),
        "slot_hidden_seq_w": _xavier(nk(), (feat, hidden_units), bf16),
        "slot_hidden_seq_b": jnp.zeros((hidden_units,), jnp.float32),
        "slot_hidden_cls_w": _xavier(nk(), (feat, hidden_units), bf16),
        "slot_hidden_cls_b": jnp.zeros((hidden_units,), jnp.float32),
        # tiny classifier heads (N = 6/5/4): plain jnp (lane-sparse outputs)
        "intent_classifier_w": _xavier(nk(), (hidden_units, intent_dim)),
        "intent_classifier_b": jnp.zeros((intent_dim,), jnp.float32),
        "slot_classifier_seq_w": _xavier(nk(), (hidden_units, tag_dim)),
        "slot_classifier_seq_b": jnp.zeros((tag_dim,), jnp.float32),
        "slot_classifier_cls_w": _xavier(nk(), (hidden_units, slot_dim)),
        "slot_classifier_cls_b": jnp.zeros((slot_dim,), jnp.float32),
    }
    return params


# ----------------------------------------------------------------------------
# BERT encoder forward (Pallas kernels inside)
# ----------------------------------------------------------------------------
def bert_forward(bp, input_ids, attention_mask):
    B, S = input_ids.shape
    H = bp["word_emb"].shape[1]
    nh = bp["num_heads"]

    # embeddings (gathers are plain-JAX glue); token_type_ids == 0
    x = (bp["word_emb"][input_ids]
         + bp["pos_emb"][jnp.arange(S)][None, :, :]
         + bp["type_emb"][0][None, None, :])
    h2 = layernorm(x.reshape(B * S, H), bp["emb_ln_g"], bp["emb_ln_b"],
                   out_dtype=jnp.bfloat16)                    # (B*S, H) bf16

    # additive key-padding mask, (B, 1, S); broadcast inside the attention kernel
    addmask = ((1.0 - attention_mask.astype(jnp.float32)) * -1e9)[:, None, :]

    for layer in bp["layers"]:
        # fused QKV projection -> (B*S, 3H); reshape to (B, S, 3H) is free
        qkv = dense(h2, layer["qkv_w"], layer["qkv_b"])
        ctx = attention(qkv.reshape(B, S, 3 * H), addmask, nh)     # (B, S, H)
        # attention output projection + residual + LayerNorm (fused)
        h2 = dense_res_ln(ctx.reshape(B * S, H), layer["o_w"], layer["o_b"],
                          h2, layer["ln1_g"], layer["ln1_b"])
        # FFN: up-proj + gelu (fused epilogue), then down-proj + residual + LN
        inter = dense(h2, layer["i_w"], layer["i_b"], act="gelu")
        h2 = dense_res_ln(inter, layer["f_w"], layer["f_b"],
                          h2, layer["ln2_g"], layer["ln2_b"])

    seq_out = h2.reshape(B, S, H)                             # bf16
    pooled = dense(seq_out[:, 0, :], bp["pooler_w"], bp["pooler_b"], act="tanh")
    return seq_out, pooled


# ----------------------------------------------------------------------------
# JointBERT forward
# ----------------------------------------------------------------------------
def _linear(x, w, b):
    return jnp.dot(x.astype(jnp.float32), w,
                   preferred_element_type=jnp.float32) + b


def _bce_with_logits(logits, targets, pos_weight):
    logits = logits.astype(jnp.float32)
    log_p = jax.nn.log_sigmoid(logits)
    log_1mp = jax.nn.log_sigmoid(-logits)
    loss = -(pos_weight * targets * log_p + (1.0 - targets) * log_1mp)
    return jnp.mean(loss)


def joint_bert_forward(params, word_seq, word_mask,
                       tag_seq=None, tag_mask=None, intent_t=None, slot_t=None,
                       context_seq=None, context_mask=None):
    bp = params["bert"]
    sequence_output, pooled_output = bert_forward(bp, word_seq, word_mask)

    if params["context"] and context_seq is not None:
        context_output = bert_forward(bp, context_seq, context_mask)[1]
        B, S, H = sequence_output.shape
        sequence_output = jnp.concatenate(
            [jnp.broadcast_to(context_output[:, None, :], (B, S, H)), sequence_output],
            axis=-1)
        pooled_output = jnp.concatenate([context_output, pooled_output], axis=-1)

    B, S, F = sequence_output.shape

    if params["hidden_units"] > 0:
        seq2 = dense(sequence_output.reshape(B * S, F),
                     params["slot_hidden_seq_w"], params["slot_hidden_seq_b"], act="relu")
        pooled_slot = dense(pooled_output,
                            params["slot_hidden_cls_w"], params["slot_hidden_cls_b"], act="relu")
        pooled_intent = dense(pooled_output,
                              params["intent_hidden_w"], params["intent_hidden_b"], act="relu")
    else:
        seq2 = sequence_output.reshape(B * S, F)
        pooled_slot = pooled_output
        pooled_intent = pooled_output

    # dropout is identity in eval mode; tiny heads in plain jnp (lane-sparse N)
    slot_logits_seq = _linear(seq2, params["slot_classifier_seq_w"],
                              params["slot_classifier_seq_b"]).reshape(B, S, params["tag_dim"])
    slot_logits_cls = _linear(pooled_slot, params["slot_classifier_cls_w"],
                              params["slot_classifier_cls_b"])
    intent_logits = _linear(pooled_intent, params["intent_classifier_w"],
                            params["intent_classifier_b"])

    outputs = (slot_logits_seq, slot_logits_cls, intent_logits)

    if tag_seq is not None:
        logits = slot_logits_seq.reshape(-1, params["tag_dim"])
        labels = tag_seq.reshape(-1)
        active = (tag_mask.reshape(-1) == 1).astype(jnp.float32)
        logp = jax.nn.log_softmax(logits, axis=-1)
        nll = -jnp.take_along_axis(logp, labels[:, None], axis=-1)[:, 0]
        slot_loss_seq = jnp.sum(nll * active) / jnp.maximum(jnp.sum(active), 1.0)
        outputs = outputs + (slot_loss_seq,)
    if slot_t is not None:
        outputs = outputs + (_bce_with_logits(slot_logits_cls, slot_t, params["slot_weight"]),)
    if intent_t is not None:
        outputs = outputs + (_bce_with_logits(intent_logits, intent_t, params["intent_weight"]),)
    return outputs


# ----------------------------------------------------------------------------
if __name__ == "__main__":
    key = jax.random.PRNGKey(0)
    k_param, k_w, k_c, k_tag, k_tm, k_int, k_slot = jax.random.split(key, 7)

    # small BERT config
    VOCAB, MAX_POS, H, NH, INTER, LAYERS = 64, 16, 128, 2, 256, 2
    B, S = 2, 8
    TAG_DIM, SLOT_DIM, INTENT_DIM, HIDDEN_UNITS = 6, 5, 4, 64
    CONTEXT = True

    params = make_params(k_param, vocab=VOCAB, max_pos=MAX_POS, H=H, nh=NH,
                         inter=INTER, layers=LAYERS, tag_dim=TAG_DIM,
                         slot_dim=SLOT_DIM, intent_dim=INTENT_DIM,
                         hidden_units=HIDDEN_UNITS, context=CONTEXT)

    word_seq = jax.random.randint(k_w, (B, S), 0, VOCAB, dtype=jnp.int32)
    word_mask = jnp.ones((B, S), jnp.int32).at[:, -2:].set(0)       # some padding
    context_seq = jax.random.randint(k_c, (B, S), 0, VOCAB, dtype=jnp.int32)
    context_mask = jnp.ones((B, S), jnp.int32)
    tag_seq = jax.random.randint(k_tag, (B, S), 0, TAG_DIM, dtype=jnp.int32)
    tag_mask = word_mask
    intent_t = (jax.random.uniform(k_int, (B, INTENT_DIM)) > 0.5).astype(jnp.float32)
    slot_t = (jax.random.uniform(k_slot, (B, SLOT_DIM)) > 0.5).astype(jnp.float32)

    outs = joint_bert_forward(params, word_seq, word_mask,
                              tag_seq=tag_seq, tag_mask=tag_mask,
                              intent_t=intent_t, slot_t=slot_t,
                              context_seq=context_seq, context_mask=context_mask)
    outs = jax.block_until_ready(outs)

    slot_logits_seq, slot_logits_cls, intent_logits = outs[0], outs[1], outs[2]
    assert slot_logits_seq.shape == (B, S, TAG_DIM)
    assert slot_logits_cls.shape == (B, SLOT_DIM)
    assert intent_logits.shape == (B, INTENT_DIM)
    assert all(jnp.isfinite(o.astype(jnp.float32)).all() for o in outs)
    print("KERNEL_OK")
</pallas_src>

<mosaic_0001>
module attributes {stable_mosaic.version = 11 : i64} {
  func.func @k(%arg0: i32, %arg1: memref<8x128xf32, #tpu.memory_space<vmem>>, %arg2: memref<8x128xf32, #tpu.memory_space<vmem>>, %arg3: memref<8x128xf32, #tpu.memory_space<vmem>>) attributes {dimension_semantics = [#tpu.dimension_semantics<arbitrary>], iteration_bounds = array<i64: 2>, scalar_prefetch = 0 : i64, scratch_operands = 0 : i64, tpu.core_type = #tpu.core_type<tc>, window_params = [{transform_indices = @transform_0, window_bounds = array<i64: 8, 128>}, {pipeline_mode = #tpu.pipeline_mode<synchronous>, transform_indices = @transform_1, window_bounds = array<i64: 8, 128>}, {transform_indices = @transform_2, window_bounds = array<i64: 8, 128>}]} {
    %c0 = arith.constant 0 : index
    %c0_0 = arith.constant 0 : index
    %0 = vector.load %arg1[%c0, %c0_0] : memref<8x128xf32, #tpu.memory_space<vmem>>, vector<8x128xf32>
    %c0_1 = arith.constant 0 : index
    %c0_2 = arith.constant 0 : index
    %1 = vector.load %arg2[%c0_1, %c0_2] : memref<8x128xf32, #tpu.memory_space<vmem>>, vector<8x128xf32>
    %2 = arith.addf %0, %1 : vector<8x128xf32>
    %c0_3 = arith.constant 0 : index
    %c0_4 = arith.constant 0 : index
    %3 = vector.load %arg3[%c0_3, %c0_4] : memref<8x128xf32, #tpu.memory_space<vmem>>, vector<8x128xf32>
    tpu.vector_store %arg3[%c0_3, %c0_4], %2 {strides = array<i32>} : memref<8x128xf32, #tpu.memory_space<vmem>>, vector<8x128xf32>,
    return
  }
  func.func @transform_0(%arg0: i32) -> (i32, i32) {
    %c0_i32 = arith.constant 0 : i32
    %c0_i32_0 = arith.constant 0 : i32
    return %arg0, %c0_i32 : i32, i32
  }
  func.func @transform_1(%arg0: i32) -> (i32, i32) {
    %c0_i32 = arith.constant 0 : i32
    %c0_i32_0 = arith.constant 0 : i32
    %c0_i32_1 = arith.constant 0 : i32
    return %c0_i32, %c0_i32_0 : i32, i32
  }
  func.func @transform_2(%arg0: i32) -> (i32, i32) {
    %c0_i32 = arith.constant 0 : i32
    %c0_i32_0 = arith.constant 0 : i32
    return %arg0, %c0_i32 : i32, i32
  }
}

module attributes {stable_mosaic.version = 11 : i64} {
  func.func @_layernorm_kernel(%arg0: i32, %arg1: memref<16x128xf32, #tpu.memory_space<vmem>>, %arg2: memref<1x128xf32, #tpu.memory_space<vmem>>, %arg3: memref<1x128xf32, #tpu.memory_space<vmem>>, %arg4: memref<16x128xbf16, #tpu.memory_space<vmem>>) attributes {dimension_semantics = [#tpu.dimension_semantics<parallel>], iteration_bounds = array<i64: 1>, scalar_prefetch = 0 : i64, scratch_operands = 0 : i64, tpu.core_type = #tpu.core_type<tc>, window_params = [{transform_indices = @transform_0, window_bounds = array<i64: 16, 128>}, {pipeline_mode = #tpu.pipeline_mode<synchronous>, transform_indices = @transform_1, window_bounds = array<i64: 1, 128>}, {pipeline_mode = #tpu.pipeline_mode<synchronous>, transform_indices = @transform_2, window_bounds = array<i64: 1, 128>}, {transform_indices = @transform_3, window_bounds = array<i64: 16, 128>}]} {
    %c0 = arith.constant 0 : index
    %c0_0 = arith.constant 0 : index
    %0 = vector.load %arg1[%c0, %c0_0] : memref<16x128xf32, #tpu.memory_space<vmem>>, vector<16x128xf32>
    %cst = arith.constant dense<0.000000e+00> : vector<16xf32>
    %1 = vector.multi_reduction <add>, %0, %cst [1] : vector<16x128xf32> to vector<16xf32>
    %2 = vector.shape_cast %1 : vector<16xf32> to vector<16x1xf32>
    %cst_1 = arith.constant 1.280000e+02 : f32
    %3 = vector.broadcast %cst_1 : f32 to vector<16x1xf32>
    %4 = arith.divf %2, %3 : vector<16x1xf32>
    %5 = vector.broadcast %4 : vector<16x1xf32> to vector<16x128xf32>
    %6 = arith.subf %0, %5 : vector<16x128xf32>
    %7 = arith.mulf %6, %6 : vector<16x128xf32>
    %cst_2 = arith.constant dense<0.000000e+00> : vector<16xf32>
    %8 = vector.multi_reduction <add>, %7, %cst_2 [1] : vector<16x128xf32> to vector<16xf32>
    %9 = vector.shape_cast %8 : vector<16xf32> to vector<16x1xf32>
    %cst_3 = arith.constant 1.280000e+02 : f32
    %10 = vector.broadcast %cst_3 : f32 to vector<16x1xf32>
    %11 = arith.divf %9, %10 : vector<16x1xf32>
    %12 = vector.broadcast %4 : vector<16x1xf32> to vector<16x128xf32>
    %13 = arith.subf %0, %12 : vector<16x128xf32>
    %cst_4 = arith.constant 9.99999996E-13 : f32
    %14 = vector.broadcast %cst_4 : f32 to vector<16x1xf32>
    %15 = arith.addf %11, %14 : vector<16x1xf32>
    %16 = math.rsqrt %15 : vector<16x1xf32>
    %17 = vector.broadcast %16 : vector<16x1xf32> to vector<16x128xf32>
    %18 = arith.mulf %13, %17 : vector<16x128xf32>
    %c0_5 = arith.constant 0 : index
    %c0_6 = arith.constant 0 : index
    %19 = vector.load %arg2[%c0_5, %c0_6] : memref<1x128xf32, #tpu.memory_space<vmem>>, vector<1x128xf32>
    %20 = vector.broadcast %19 : vector<1x128xf32> to vector<16x128xf32>
    %21 = arith.mulf %18, %20 : vector<16x128xf32>
    %c0_7 = arith.constant 0 : index
    %c0_8 = arith.constant 0 : index
    %22 = vector.load %arg3[%c0_7, %c0_8] : memref<1x128xf32, #tpu.memory_space<vmem>>, vector<1x128xf32>
    %23 = vector.broadcast %22 : vector<1x128xf32> to vector<16x128xf32>
    %24 = arith.addf %21, %23 : vector<16x128xf32>
    %25 = arith.truncf %24 : vector<16x128xf32> to vector<16x128xbf16>
    %c0_9 = arith.constant 0 : index
    %c0_10 = arith.constant 0 : index
    %26 = vector.load %arg4[%c0_9, %c0_10] : memref<16x128xbf16, #tpu.memory_space<vmem>>, vector<16x128xbf16>
    tpu.vector_store %arg4[%c0_9, %c0_10], %25 {strides = array<i32>} : memref<16x128xbf16, #tpu.memory_space<vmem>>, vector<16x128xbf16>,
    return
  }
  func.func @transform_0(%arg0: i32) -> (i32, i32) {
    %c0_i32 = arith.constant 0 : i32
    %c0_i32_0 = arith.constant 0 : i32
    return %arg0, %c0_i32 : i32, i32
  }
  func.func @transform_1(%arg0: i32) -> (i32, i32) {
    %c0_i32 = arith.constant 0 : i32
    %c0_i32_0 = arith.constant 0 : i32
    %c0_i32_1 = arith.constant 0 : i32
    return %c0_i32, %c0_i32_0 : i32, i32
  }
  func.func @transform_2(%arg0: i32) -> (i32, i32) {
    %c0_i32 = arith.constant 0 : i32
    %c0_i32_0 = arith.constant 0 : i32
    %c0_i32_1 = arith.constant 0 : i32
    return %c0_i32, %c0_i32_0 : i32, i32
  }
  func.func @transform_3(%arg0: i32) -> (i32, i32) {
    %c0_i32 = arith.constant 0 : i32
    %c0_i32_0 = arith.constant 0 : i32
    return %arg0, %c0_i32 : i32, i32
  }
}

</mosaic_0001>

<bundles_post_ra>
// kernel: tpu_custom_call.1
= control target key start
LH: loop header
LB: loop body
LE: loop exit
PB: predicated region body
PF: predicated region fallthrough
CT: control target
= control target key end

     0   :  { %7 = vsyncpa [#allocation3], 0  ;;  %s690_s0 = inlined_call_operand.hbm [shape: f32[16,128], index: 0, kind: input, shape index: {}]   ;;  %s691_s1 = inlined_call_operand.hbm [shape: f32[8,128], index: 1, kind: input, shape index: {}]   ;;  %s692_s2 = inlined_call_operand.hbm [shape: f32[16,128], index: 2, kind: output, shape index: {}]  }
   0x1   :  { %9 = vsyncpa [#allocation3 + $0x1], 0 }
   0x2   :  { %10 = vsyncpa [#allocation6], 0 }
   0x3   :  { %11 = vsyncpa [#allocation4], 0 }
   0x4   :  { %13 = vsyncpa [#allocation4 + $0x1], 0  ;;  %s489_s9 = smov 0   ;;  %s491_s10 = smov 0  }
   0x5   :  { %s493_s11 = smov 0   ;;  %s495_s12 = smov 0  }
   0x6 LB: > { %s510_s13 = sadd.s32 4294967295, %s469_s12   ;;  %s270_s14 = sadd.s32 4294967294, %s469_s12   ;;  %s469_s12 = sphi %s495_s12, %s716_s12   ;;  %s465_s11 = sphi %s493_s11, %s715_s11   ;;  %s461_s10 = sphi %s491_s10, %s714_s10   ;;  %s457_s9 = sphi %s489_s9, %s713_s9  }
   0x7   : > { %p39_p0 = scmp.ne.s32.totalorder %s461_s10, %s457_s9  ;;  %p693_p1 = scmp.eq.s32.totalorder %s510_s13, 0 }
   0x8   : > { %p90_p3 = scmp.eq.s32.totalorder %s270_s14, 1  ;;  %p271_p5 = scmp.ge.s32.totalorder %s469_s12, 1 }
   0x9   : > { %p519_p4 = por %p693_p1, %p39_p0  ;;  %p97_p7 = scmp.lt.s32.totalorder %s469_s12, 3 }
   0xa   : > { %p524_p6 = por %p90_p3, %p39_p0  ;;  %s471_s18 = smov [#allocation5]  }
   0xb   : > { %s696_s15 = scalar_select %p519_p4, 1, 0 }
   0xc   : > { %s697_s16 = scalar_select %p524_p6, 1, 0 }
   0xd   : > { %p529_p8 = pnand %p271_p5, %p97_p7  ;;  %s110_s19 = sshll.u32 %s471_s18, 4  ;;  %s111_s19 = int_to_ptr.vmem [resolvable:$true] %s110_s19 }
   0xe   : > { %s537_s20 = sadd.s32 1, %s469_s12   ;;  %s26_s24 = sadd.s32 1, %s465_s11 }
   0xf   : > { %s698_s17 = scalar_select %p529_p8, 1, 0 }
  0x10   : > { %p292_p10 = pneg %p529_p8  ;;  %s23_s22 = ssub.s32 %s469_s12, %s537_s20 }
  0x11   : > { %p547_p12 = scmp.eq.s32.totalorder %s23_s22, 0  ;;  %s341_s27 = scalar_lea.hbm %s691_s1, 128 }
  0x12   : > { %p541_p11 = pnand %p292_p10, %p693_p1  ;;  %p342_p0 = scmp.ne.s32.totalorder %s691_s1, %s341_s27 }
  0x13   : > { %s700_s23 = scalar_select %p547_p12, 1, 0 }
  0x14   : > { %p343_p3 = pneg %p541_p11  ;;  %p348_p10 = scmp.lt.u32.totalorder %s341_s27, %s691_s1 }
  0x16   : > { %p344_p5 = pnand %p343_p3, %p342_p0 }
  0x18   : > { %p345_p7 = pneg %p344_p5 }
  0x1a   : > { %p350_p9 = pnand %p348_p10, %p345_p7 }
  0x1c   : > { %353 = shalt.err (!%p350_p9)
}
  0x1d   : > { %s354_s4 = scalar_lea.vmem %s111_s19, 128  ;;  %p362_p6 = scmp.lt.s32.totalorder %s111_s19, %s111_s19 }
  0x1e   : > { %p355_p1 = scmp.ne.s32.totalorder %s111_s19, %s354_s4  ;;  %p363_p4 = scmp.lt.s32.totalorder %s354_s4, %s354_s4 }
  0x20   : > { %p357_p2 = pnand %p355_p1, %p343_p3  ;;  %p364_p8 = por %p363_p4, %p362_p6 }
  0x22   : > { %p358_p13 = pneg %p357_p2 }
  0x24   : > { %p365_p12 = pnand %p364_p8, %p358_p13 }
  0x26   : > { %368 = shalt.err (!%p365_p12)
}
  0x27   : > { %295 = dma.hbm_to_vmem [thread:$0]  (!%p541_p11), %s691_s1, 128, %s111_s19, [#allocation6]  }
  0x28   : > { %p701_p1 = scmp.ne.s32.totalorder %s700_s23, 0  ;;  %p34_p2 = scmp.eq.s32.totalorder %s469_s12, 0 }
  0x29   : > { %p702_p4 = scmp.ne.s32.totalorder %s465_s11, %s461_s10  ;;  %p703_p6 = scmp.eq.s32.totalorder %s510_s13, 1 }
  0x2a   : > { %s573_s7 = scalar_select %p701_p1, %s465_s11, %s26_s24  }
  0x2b   : > { %p581_p8 = por %p703_p6, %p702_p4  ;;  %p305_p9 = scmp.lt.s32.totalorder %s469_s12, 2 }
  0x2c   : > { %s121_s14 = sand.u32 1, %s465_s11   ;;  %p705_p12 = pmov %p702_p4 }
  0x2d   : > { %s274_s18 = sshll.u32 %s121_s14, 3  ;;  %s275_s21 = sshll.u32 %s469_s12, 7 }
  0x2e   : > { %p35_p13 = por %p34_p2, %p705_p12  ;;  %s594_s19 = scalar_lea.hbm %s690_s0, %s275_s21 }
  0x2f   : > { %s125_s23 = scalar_lea.vmem [#allocation2], %s274_s18  ;;  %s122_s27 = scalar_lea.sflag [#allocation3], %s121_s14 }
  0x30   : > { %s132_s24 = sshll.u32 %s125_s23, 4  ;;  %p596_p11 = pnand %p305_p9, %p35_p13  ;;  %s600_s24 = int_to_ptr.vmem [resolvable:$true] %s132_s24 }
  0x31   : > { %s369_s28 = scalar_lea.hbm %s594_s19, 128  ;;  %s374_s3 = scalar_lea.hbm %s690_s0, 256 }
  0x32   : > { %p370_p0 = scmp.ne.s32.totalorder %s594_s19, %s369_s28  ;;  %p371_p3 = pneg %p596_p11 }
  0x33   : > { %p375_p10 = scmp.lt.u32.totalorder %s594_s19, %s690_s0  ;;  %p376_p1 = scmp.lt.u32.totalorder %s374_s3, %s369_s28 }
  0x34   : > { %p372_p5 = pnand %p371_p3, %p370_p0  ;;  %p378_p4 = scmp.lt.u32.totalorder %s369_s28, %s594_s19 }
  0x35   : > { %p377_p2 = por %p376_p1, %p375_p10 }
  0x36   : > { %p373_p7 = pneg %p372_p5 }
  0x37   : > { %p379_p6 = por %p378_p4, %p377_p2 }
  0x39   : > { %p380_p9 = pnand %p379_p6, %p373_p7 }
  0x3b   : > { %383 = shalt.err (!%p380_p9)
}
  0x3c   : > { %s384_s6 = scalar_lea.vmem %s600_s24, 128  ;;  %s472_s14 = smov [#allocation2]  }
  0x3d   : > { %p385_p12 = scmp.ne.s32.totalorder %s600_s24, %s384_s6  ;;  %s389_s18 = sshll.u32 %s472_s14, 4  ;;  %s390_s18 = int_to_ptr.vmem [resolvable:$false] %s389_s18 }
  0x3e   : > { %s391_s21 = scalar_lea.vmem %s390_s18, 256  ;;  %p392_p5 = scmp.lt.s32.totalorder %s600_s24, %s390_s18 }
  0x3f   : > { %p387_p13 = pnand %p385_p12, %p371_p3  ;;  %p393_p10 = scmp.lt.s32.totalorder %s391_s21, %s384_s6 }
  0x41   : > { %p388_p0 = pneg %p387_p13  ;;  %p394_p1 = por %p393_p10, %p392_p5 }
  0x43   : > { %p395_p2 = pnand %p394_p1, %p388_p0 }
  0x45   : > { %398 = shalt.err (!%p395_p2)
}
  0x46   : > { %299 = dma.hbm_to_vmem [thread:$0]  (!%p596_p11), %s594_s19, 128, %s600_s24, %s122_s27  }
  0x47   : > { %p707_p7 = scmp.ne.s32.totalorder %s698_s17, 0 }
  0x48   : > { %s630_s22 = sand.u32 (!%p707_p7), 1, %s461_s10   ;;  %p708_p3 = scmp.ne.s32.totalorder (!%p707_p7), %s696_s15, 0 }
  0x49   : > { %141 = sbr.rel (%p707_p7) target bundleno = 109 (0x6d), region = 28  ;;  %s277_s25 = sshll.u32 (!%p707_p7), %s630_s22, 3 }
  0x4a   : > { %s144_s23 = scalar_lea.sflag (!%p707_p7), [#allocation3], %s630_s22  ;;  %s147_s28 = scalar_lea.vmem (!%p707_p7), [#allocation2], %s277_s25 }
  0x50   : > { %444 = dma.done.wait (%p708_p3), %s144_s23, 128  }
  0x51   : > { %446 = vsyncadd (%p708_p3), %s144_s23, 4294967168  ;;  %p709_p4 = scmp.eq.s32.totalorder %s510_s13, 0 }
  0x53   : > { %448 = dma.done.wait (%p709_p4), [#allocation6], 128   ;;  %p710_p11 = pmov %p709_p4 }
  0x54   : > { %s171_s17 = scalar_lea.vmem [#allocation7], %s277_s25  ;;  %s281_s24 = sshll.u32 %s510_s13, 7  ;;  %v172_v0 = vld [vmem:[%s147_s28] sm:$0xff]  ;;  %v173_v1 = vld [vmem:[#allocation5] sm:$0xff] }
  0x55   : > { %450 = vsyncadd (%p710_p11), [#allocation6], 4294967168  ;;  %s190_s19 = sshll.u32 %s171_s17, 4  ;;  %v174_v2 = vadd.f32 %v173_v1, %v172_v0  ;;  %s648_s27 = scalar_lea.hbm %s692_s2, %s281_s24  ;;  %s643_s19 = int_to_ptr.vmem [resolvable:$true] %s190_s19 }
  0x56   : > { %s177_s29 = scalar_lea.sflag [#allocation4], %s630_s22  ;;  %s399_s30 = scalar_lea.vmem %s643_s19, 128 }
  0x57   : > { %175 = vst [vmem:[%s171_s17] sm:$0xff] %v174_v2  ;;  %p400_p6 = scmp.ne.s32.totalorder %s643_s19, %s399_s30  ;;  %s473_s13 = smov [#allocation7]  }
  0x58   : > { %s403_s3 = sshll.u32 %s473_s13, 4  ;;  %s404_s3 = int_to_ptr.vmem [resolvable:$false] %s403_s3 }
  0x59   : > { %p401_p9 = pnand %p400_p6, %p581_p8  ;;  %s405_s4 = scalar_lea.vmem %s404_s3, 256 }
  0x5a   : > { %p406_p13 = scmp.lt.s32.totalorder %s643_s19, %s404_s3  ;;  %p407_p0 = scmp.lt.s32.totalorder %s405_s4, %s399_s30 }
  0x5b   : > { %p402_p12 = pneg %p401_p9 }
  0x5c   : > { %p408_p5 = por %p407_p0, %p406_p13 }
  0x5e   : > { %p409_p10 = pnand %p408_p5, %p402_p12 }
  0x60   : > { %412 = shalt.err (!%p409_p10)
}
  0x61   : > { %s413_s5 = scalar_lea.hbm %s648_s27, 128  ;;  %s417_s18 = scalar_lea.hbm %s692_s2, 256 }
  0x62   : > { %p414_p1 = scmp.ne.s32.totalorder %s648_s27, %s413_s5  ;;  %p418_p3 = scmp.lt.u32.totalorder %s648_s27, %s692_s2 }
  0x63   : > { %p419_p4 = scmp.lt.u32.totalorder %s417_s18, %s413_s5  ;;  %p421_p6 = scmp.lt.u32.totalorder %s413_s5, %s648_s27 }
  0x64   : > { %p415_p2 = pnand %p414_p1, %p581_p8 }
  0x65   : > { %p420_p11 = por %p419_p4, %p418_p3 }
  0x66   : > { %p416_p7 = pneg %p415_p2 }
  0x67   : > { %p422_p9 = por %p421_p6, %p420_p11 }
  0x69   : > { %p423_p12 = pnand %p422_p9, %p416_p7 }
  0x6b   : > { %426 = shalt.err (!%p423_p12)
}
  0x6c   : > { %290 = dma.vmem_to_hbm [thread:$0]  (%p581_p8), %s643_s19, 128, %s648_s27, %s177_s29  }
  0x6d PF: > { %s202_s25 = sand.u32 1, %s457_s9   ;;  %p711_p13 = scmp.ne.s32.totalorder %s697_s16, 0 }
  0x6e   : > { %p712_p0 = scmp.ge.s32.totalorder %s469_s12, 2  ;;  %s203_s23 = scalar_lea.sflag [#allocation4], %s202_s25 }
  0x70   : > { %p301_p5 = pnand %p712_p0, %p711_p13 }
  0x72   : > { %452 = dma.done.wait (!%p301_p5), %s203_s23, 128  }
  0x73   : > { %454 = vsyncadd (!%p301_p5), %s203_s23, 4294967168  ;;  %p16_p10 = scmp.ge.s32.totalorder %s537_s20, 4   ;;  %s713_s9 = smov %s461_s10 }
  0x74   : > { %s714_s10 = smov %s465_s11  ;;  %s715_s11 = smov %s573_s7 }
  0x75   : > { %s716_s12 = smov %s537_s20  ;;  %18 = sbr.rel (!%p16_p10) target bundleno = 6 (0x6), region = 77 }
  0x7c   :  { %208 = vsyncpa [#allocation3], 1 }
  0x7d   :  { %210 = vsyncpa [#allocation3 + $0x1], 1 }
  0x7e   :  { %211 = vsyncpa [#allocation6], 1 }
  0x7f   :  { %212 = vsyncpa [#allocation4], 1 }
  0x80   :  { %214 = vsyncpa [#allocation4 + $0x1], 1 }

// kernel: tpu_custom_call.1
= control target key start
LH: loop header
LB: loop body
LE: loop exit
PB: predicated region body
PF: predicated region fallthrough
CT: control target
= control target key end

     0   :  { %8 = vsyncpa [#allocation3], 0  ;;  %s323_s0 = inlined_call_operand.hbm [shape: f32[16,128], index: 0, kind: input, shape index: {}]   ;;  %s324_s1 = inlined_call_operand.hbm [shape: f32[1,128], index: 1, kind: input, shape index: {}]   ;;  %s325_s2 = inlined_call_operand.hbm [shape: f32[1,128], index: 2, kind: input, shape index: {}]   ;;  %s326_s3 = inlined_call_operand.hbm [shape: bf16[16,128], index: 3, kind: output, shape index: {}]  }
   0x1   :  { %9 = vsyncpa [#allocation6], 0 }
   0x2   :  { %10 = vsyncpa [#allocation4], 0  ;;  %s240_s12 = smov [#allocation5]   ;;  %s241_s14 = smov [#allocation2]  }
   0x3   :  { %s29_s13 = sshll.u32 %s240_s12, 4  ;;  %s16_s15 = sshll.u32 %s241_s14, 4  ;;  %s30_s13 = int_to_ptr.vmem [resolvable:$true] %s29_s13  ;;  %s268_s15 = int_to_ptr.vmem [resolvable:$true] %s16_s15 }
   0x4   :  { %s146_s18 = scalar_lea.hbm %s324_s1, 16 }
   0x5   :  { %p147_p0 = scmp.ne.s32.totalorder %s324_s1, %s146_s18  ;;  %p150_p1 = scmp.lt.u32.totalorder %s146_s18, %s324_s1 }
   0x7   :  { %p152_p2 = pnand %p150_p1, %p147_p0 }
   0x9   :  { %155 = shalt.err (!%p152_p2)
}
   0xa   :  { %s156_s23 = scalar_lea.vmem %s30_s13, 16  ;;  %s160_s24 = scalar_lea.vmem %s30_s13, 32 }
   0xb   :  { %p157_p3 = scmp.ne.s32.totalorder %s30_s13, %s156_s23  ;;  %p161_p4 = scmp.lt.s32.totalorder %s30_s13, %s30_s13 }
   0xc   :  { %p162_p5 = scmp.lt.s32.totalorder %s160_s24, %s156_s23 }
   0xe   :  { %p163_p6 = por %p162_p5, %p161_p4 }
  0x10   :  { %p164_p7 = pnand %p163_p6, %p157_p3 }
  0x12   :  { %167 = shalt.err (!%p164_p7)
}
  0x13   :  { %32 = dma.hbm_to_vmem [thread:$0]  %s324_s1, 16, %s30_s13, [#allocation6]  }
  0x14   :  { %s168_s29 = scalar_lea.hbm %s323_s0, 256 }
  0x15   :  { %p169_p8 = scmp.ne.s32.totalorder %s323_s0, %s168_s29  ;;  %p172_p9 = scmp.lt.u32.totalorder %s168_s29, %s323_s0 }
  0x17   :  { %p174_p10 = pnand %p172_p9, %p169_p8 }
  0x19   :  { %177 = shalt.err (!%p174_p10)
}
  0x1a   :  { %s178_s7 = scalar_lea.vmem %s268_s15, 256  ;;  %p183_p12 = scmp.lt.s32.totalorder %s268_s15, %s268_s15 }
  0x1b   :  { %p179_p11 = scmp.ne.s32.totalorder %s268_s15, %s178_s7  ;;  %p184_p13 = scmp.lt.s32.totalorder %s178_s7, %s178_s7 }
  0x1d   :  { %p185_p0 = por %p184_p13, %p183_p12 }
  0x1f   :  { %p186_p1 = pnand %p185_p0, %p179_p11 }
  0x21   :  { %189 = shalt.err (!%p186_p1)
}
  0x22   :  { %s242_s1 = smov 128   ;;  %s243_s8 = smov 8  }
  0x23   :  { %22 = dma.hbm_to_vmem [thread:$0]  %s323_s0, 256, %s268_s15, [#allocation3], %s242_s1, %s242_s1, %s243_s8  }
  0x24   :  { %s244_s11 = smov [#allocation7]   ;;  %s190_s16 = scalar_lea.hbm %s325_s2, 16 }
  0x25   :  { %s39_s12 = sshll.u32 %s244_s11, 4  ;;  %p191_p2 = scmp.ne.s32.totalorder %s325_s2, %s190_s16  ;;  %s40_s12 = int_to_ptr.vmem [resolvable:$true] %s39_s12 }
  0x26   :  { %p194_p3 = scmp.lt.u32.totalorder %s190_s16, %s325_s2 }
  0x28   :  { %p196_p4 = pnand %p194_p3, %p191_p2 }
  0x2a   :  { %199 = shalt.err (!%p196_p4)
}
  0x2b   :  { %s200_s21 = scalar_lea.vmem %s40_s12, 16  ;;  %s204_s0 = scalar_lea.vmem %s40_s12, 32 }
  0x2c   :  { %p201_p5 = scmp.ne.s32.totalorder %s40_s12, %s200_s21  ;;  %p205_p6 = scmp.lt.s32.totalorder %s40_s12, %s40_s12 }
  0x2d   :  { %p206_p7 = scmp.lt.s32.totalorder %s204_s0, %s200_s21 }
  0x2f   :  { %p207_p8 = por %p206_p7, %p205_p6 }
  0x31   :  { %p208_p9 = pnand %p207_p8, %p201_p5 }
  0x33   :  { %211 = shalt.err (!%p208_p9)
}
  0x34   :  { %42 = dma.hbm_to_vmem [thread:$0]  %s325_s2, 16, %s40_s12, [#allocation6]  }
  0x35   :  { %234 = dma.done.wait [#allocation3], 256  }
  0x36   :  { %235 = vsyncadd [#allocation3], 4294967040 }
  0x37   :  { %236 = dma.done.wait [#allocation6], 32  }
  0x38   :  { %237 = vsyncadd [#allocation6], 4294967264  ;;  %v52_v0 = vld [vmem:[#allocation2] sm:$0xff]  ;;  %v53_v1 = vld [vmem:[#allocation2 + $0x8] sm:$0xff]  ;;  %s245_s2 = smov [#allocation8]  }
  0x39   :  { %54 = vadd.xlane.f32.xlu0 %v52_v0  ;;  %v123_v18 = vld [vmem:[#allocation5] ss:$0 sm:$0xff]  ;;  %v124_v22 = vld [vmem:[#allocation7] ss:$0 sm:$0xff]  ;;  %s110_s23 = sshll.u32 %s245_s2, 4  ;;  %s111_s23 = int_to_ptr.vmem [resolvable:$true] %s110_s23 }
  0x3a   :  { %s212_s24 = scalar_lea.vmem %s111_s23, 128  ;;  %p217_p11 = scmp.lt.s32.totalorder %s111_s23, %s111_s23 }
  0x3b   :  { %p213_p10 = scmp.ne.s32.totalorder %s111_s23, %s212_s24  ;;  %p218_p12 = scmp.lt.s32.totalorder %s212_s24, %s212_s24 }
  0x3d   :  { %56 = vadd.xlane.f32.xlu0 %v53_v1  ;;  %p219_p13 = por %p218_p12, %p217_p11 }
  0x3f   :  { %p220_p0 = pnand %p219_p13, %p213_p10 }
  0xc6   :  { %v55_v2 = vpop.xlane.xlu0 %54 }
  0xc7   :  { %v59_v3 = vmul.f32 0.0078125, %v55_v2 }
  0xc9   :  { %v61_v4 = vsub.f32 %v52_v0, %v59_v3 }
  0xca   :  { %v57_v5 = vpop.xlane.xlu0 %56 }
  0xcb   :  { %v60_v6 = vmul.f32 0.0078125, %v57_v5  ;;  %v63_v7 = vmul.f32 %v61_v4, %v61_v4 }
  0xcd   :  { %v62_v8 = vsub.f32 %v53_v1, %v60_v6  ;;  %65 = vadd.xlane.f32.xlu1 %v63_v7 }
  0xcf   :  { %v64_v9 = vmul.f32 %v62_v8, %v62_v8 }
  0xd1   :  { %67 = vadd.xlane.f32.xlu1 %v64_v9 }
 0x15a   :  { %v66_v10 = vpop.xlane.xlu1 %65 }
 0x15b   :  { %v69_v11 = vmul.f32 0.0078125, %v66_v10 }
 0x15d   :  { %v71_v12 = vadd.f32 1e-12, %v69_v11 }
 0x15e   :  { %v68_v13 = vpop.xlane.xlu1 %67 }
 0x15f   :  { %142 = vrsqrt.f32 %v71_v12  ;;  %v70_v14 = vmul.f32 0.0078125, %v68_v13 }
 0x161   :  { %v72_v15 = vadd.f32 1e-12, %v70_v14 }
 0x163   :  { %144 = vrsqrt.f32 %v72_v15 }
 0x169   :  { %v143_v16 = vpop.eup %142 }
 0x16a   :  { %v75_v17 = vmul.f32 %v143_v16, %v61_v4 }
 0x16c   :  { %v84_v21 = vmul.f32 %v123_v18, %v75_v17 }
 0x16d   :  { %v145_v19 = vpop.eup %144 }
 0x16e   :  { %v76_v20 = vmul.f32 %v145_v19, %v62_v8  ;;  %v93_v24 = vadd.f32 %v124_v22, %v84_v21 }
 0x170   :  { %v85_v23 = vmul.f32 %v123_v18, %v76_v20 }
 0x172   :  { %v94_v25 = vadd.f32 %v124_v22, %v85_v23 }
 0x174   :  { %v132_v26 = vpack.c.bf16 %v94_v25, %v93_v24 }
 0x176   :  { %133 = vst [vmem:[#allocation8] sm:$0xff] %v132_v26  }
 0x177   :  { %223 = shalt.err (!%p220_p0)
}
 0x178   :  { %s224_s27 = scalar_lea.hbm %s326_s3, 128 }
 0x179   :  { %p225_p1 = scmp.ne.s32.totalorder %s326_s3, %s224_s27  ;;  %p228_p2 = scmp.lt.u32.totalorder %s224_s27, %s326_s3 }
 0x17b   :  { %p230_p3 = pnand %p228_p2, %p225_p1 }
 0x17d   :  { %233 = shalt.err (!%p230_p3)
}
 0x17e   :  { %s246_s5 = smov 64   ;;  %s247_s6 = smov 4  }
 0x17f   :  { %116 = dma.vmem_to_hbm [thread:$0]  %s111_s23, 128, %s326_s3, [#allocation4], %s246_s5, %s246_s5, %s247_s6  }
 0x180   :  { %238 = dma.done.wait [#allocation4], 128  }
 0x181   :  { %239 = vsyncadd [#allocation4], 4294967168 }
 0x182   :  { %120 = vsyncpa [#allocation3], 1 }
 0x183   :  { %121 = vsyncpa [#allocation6], 1 }
 0x184   :  { %122 = vsyncpa [#allocation4], 1 }

</bundles_post_ra>
